<compile_context>
chip_gen: v7x
topology: tpu7x:2x2x1
jax: 0.10.0
libtpu: 0.0.40
codegen_flags: <defaults>
</compile_context>

<pallas_src>
import jax
import jax.numpy as jnp
from jax.experimental import pallas as pl
from jax.experimental.pallas import tpu as pltpu


def _posenet_fused_kernel(patch_ref, wconv_ref, bconv_ref, whead_ref,
                          bhead_ref, out_ref):
    # patch_ref : (TILE, 9*Cin)   bf16  im2col patches for TILE output pixels
    # wconv_ref : (9*Cin, Cfeat)  bf16  3x3-conv weight in im2col layout
    # bconv_ref : (1, Cfeat)      f32
    # whead_ref : (Cfeat, LANES)  bf16  [heatmap | tagmap | zero-pad] heads
    # bhead_ref : (1, LANES)      f32
    # out_ref   : (TILE, LANES)   f32
    feat = jnp.dot(patch_ref[...], wconv_ref[...],
                   preferred_element_type=jnp.float32)
    feat = jnp.maximum(feat + bconv_ref[...], 0.0)        # bias + ReLU in f32
    out = jnp.dot(feat.astype(whead_ref.dtype), whead_ref[...],
                  preferred_element_type=jnp.float32) + bhead_ref[...]
    out_ref[...] = out.astype(out_ref.dtype)


def _im2col_3x3(x_nchw):
    """NCHW input -> (B*H*W, 9*Cin) patch matrix for a stride-1 pad-1 3x3 conv."""
    B, Cin, H, W = x_nchw.shape
    x_nhwc = jnp.transpose(x_nchw, (0, 2, 3, 1))
    x_pad = jnp.pad(x_nhwc, ((0, 0), (1, 1), (1, 1), (0, 0)))
    cols = [x_pad[:, dy:dy + H, dx:dx + W, :]
            for dy in range(3) for dx in range(3)]
    patches = jnp.concatenate(cols, axis=-1)              # (B, H, W, 9*Cin)
    return patches.reshape(B * H * W, 9 * Cin)


def posenet_2branch_forward(x_nchw, params, *, tile_rows=256):
    """x_nchw: (B, Cin, H, W) float32.  Returns (heatmap, tagmap) in NCHW.

    tile_rows: rows of the flattened (B*H*W) dim per grid step.  For real
    inputs pick 1024-4096 on v5e/v6e (128 MiB VMEM) and ~half that on v7x
    (64 MiB VMEM); 256 is plenty for the toy shapes here.
    """
    wb, bb, wh, bh, wt, bt = (params[k] for k in
                              ("wb", "bb", "wh", "bh", "wt", "bt"))
    B, Cin, H, W = x_nchw.shape
    Cfeat = wb.shape[2]
    K = wh.shape[1]
    Kc = 9 * Cin                     # im2col contraction dim
    K2 = 2 * K                       # fused head width (heat + tag)
    LANES = max(128, -(-K2 // 128) * 128)   # lane-dense output width

    # --- wrapper-side prep (layout plumbing, not compute hoisting) ---------
    # im2col patch matrix, cast to bf16 for the MXU.
    patches = _im2col_3x3(x_nchw).astype(jnp.bfloat16)        # (N, 9*Cin)
    N = B * H * W
    n_pad = -(-N // tile_rows) * tile_rows
    if n_pad != N:
        patches = jnp.pad(patches, ((0, n_pad - N), (0, 0)))

    # conv weight in im2col layout (tap-major, Cin-minor) and bf16.
    wconv = wb.reshape(Kc, Cfeat).astype(jnp.bfloat16)        # (36, 32)
    bconv = bb.astype(jnp.float32)                            # (1, 32)

    # fuse the two 1x1 heads and zero-pad to a lane-dense width.
    whead = jnp.concatenate([wh, wt], axis=1)                 # (Cfeat, 2K)
    bhead = jnp.concatenate([bh, bt], axis=1)                 # (1, 2K)
    whead = jnp.pad(whead, ((0, 0), (0, LANES - K2))).astype(jnp.bfloat16)
    bhead = jnp.pad(bhead, ((0, 0), (0, LANES - K2))).astype(jnp.float32)

    grid = (n_pad // tile_rows,)

    out_pad = pl.pallas_call(
        _posenet_fused_kernel,
        out_shape=jax.ShapeDtypeStruct((n_pad, LANES), jnp.float32),
        grid=grid,
        in_specs=[
            pl.BlockSpec((tile_rows, Kc), lambda i: (i, 0)),   # patches: tiled
            pl.BlockSpec((Kc, Cfeat), lambda i: (0, 0)),       # weights: resident
            pl.BlockSpec((1, Cfeat), lambda i: (0, 0)),
            pl.BlockSpec((Cfeat, LANES), lambda i: (0, 0)),
            pl.BlockSpec((1, LANES), lambda i: (0, 0)),
        ],
        out_specs=pl.BlockSpec((tile_rows, LANES), lambda i: (i, 0)),
        compiler_params=pltpu.CompilerParams(
            dimension_semantics=("parallel",),   # shard rows across TCs (v7x)
            vmem_limit_bytes=48 << 20,           # headroom on v7x 64 MiB VMEM
        ),
    )(patches, wconv, bconv, whead, bhead)

    out = out_pad[:N, :K2]                                    # drop padding
    heat = out[:, :K].reshape(B, H, W, K)
    tag = out[:, K:K2].reshape(B, H, W, K)
    heatmap = jnp.transpose(heat, (0, 3, 1, 2))               # NCHW
    tagmap = jnp.transpose(tag, (0, 3, 1, 2))
    return heatmap, tagmap


def _reference_forward(x_nchw, params):
    """Pure-JAX f32 reference (same math, no Pallas) for a sanity check."""
    B, Cin, H, W = x_nchw.shape
    Cfeat = params["wb"].shape[2]
    K = params["wh"].shape[1]
    patches = _im2col_3x3(x_nchw)                             # f32
    feat = jnp.maximum(patches @ params["wb"].reshape(9 * Cin, Cfeat)
                       + params["bb"], 0.0)
    heat = feat @ params["wh"] + params["bh"]
    tag = feat @ params["wt"] + params["bt"]
    heat = jnp.transpose(heat.reshape(B, H, W, K), (0, 3, 1, 2))
    tag = jnp.transpose(tag.reshape(B, H, W, K), (0, 3, 1, 2))
    return heat, tag


def init_params(key, cin=4, cfeat=32, k_joints=17):
    ks = jax.random.split(key, 6)
    scale_b = 1.0 / jnp.sqrt(cin * 9.0)
    scale_h = 1.0 / jnp.sqrt(float(cfeat))
    return {
        "wb": jax.random.normal(ks[0], (9, cin, cfeat), jnp.float32) * scale_b,
        "bb": jax.random.normal(ks[1], (1, cfeat), jnp.float32) * 0.01,
        "wh": jax.random.normal(ks[2], (cfeat, k_joints), jnp.float32) * scale_h,
        "bh": jax.random.normal(ks[3], (1, k_joints), jnp.float32) * 0.01,
        "wt": jax.random.normal(ks[4], (cfeat, k_joints), jnp.float32) * scale_h,
        "bt": jax.random.normal(ks[5], (1, k_joints), jnp.float32) * 0.01,
    }


if __name__ == "__main__":
    key = jax.random.PRNGKey(0)
    k_x, k_p = jax.random.split(key)

    B, Cin, H, W = 2, 4, 16, 16
    x = jax.random.normal(k_x, (B, Cin, H, W), jnp.float32)
    params = init_params(k_p, cin=Cin, cfeat=32, k_joints=17)

    heatmap, tagmap = posenet_2branch_forward(x, params)
    jax.block_until_ready((heatmap, tagmap))

    assert heatmap.shape == (B, 17, H, W), heatmap.shape
    assert tagmap.shape == (B, 17, H, W), tagmap.shape

    # sanity check against the f32 pure-JAX reference (bf16 matmul tolerance)
    ref_heat, ref_tag = _reference_forward(x, params)
    assert float(jnp.max(jnp.abs(heatmap - ref_heat))) < 5e-2
    assert float(jnp.max(jnp.abs(tagmap - ref_tag))) < 5e-2

    print("KERNEL_OK")
</pallas_src>

<mosaic_0001>
module attributes {stable_mosaic.version = 11 : i64} {
  func.func @_posenet_fused_kernel(%arg0: i32, %arg1: memref<256x36xbf16, #tpu.memory_space<vmem>>, %arg2: memref<36x32xbf16, #tpu.memory_space<vmem>>, %arg3: memref<1x32xf32, #tpu.memory_space<vmem>>, %arg4: memref<32x128xbf16, #tpu.memory_space<vmem>>, %arg5: memref<1x128xf32, #tpu.memory_space<vmem>>, %arg6: memref<256x128xf32, #tpu.memory_space<vmem>>) attributes {dimension_semantics = [#tpu.dimension_semantics<parallel>], iteration_bounds = array<i64: 2>, scalar_prefetch = 0 : i64, scratch_operands = 0 : i64, tpu.core_type = #tpu.core_type<tc>, window_params = [{transform_indices = @transform_0, window_bounds = array<i64: 256, 36>}, {pipeline_mode = #tpu.pipeline_mode<synchronous>, transform_indices = @transform_1, window_bounds = array<i64: 36, 32>}, {pipeline_mode = #tpu.pipeline_mode<synchronous>, transform_indices = @transform_2, window_bounds = array<i64: 1, 32>}, {pipeline_mode = #tpu.pipeline_mode<synchronous>, transform_indices = @transform_3, window_bounds = array<i64: 32, 128>}, {pipeline_mode = #tpu.pipeline_mode<synchronous>, transform_indices = @transform_4, window_bounds = array<i64: 1, 128>}, {transform_indices = @transform_5, window_bounds = array<i64: 256, 128>}]} {
    %c0 = arith.constant 0 : index
    %c0_0 = arith.constant 0 : index
    %0 = vector.load %arg1[%c0, %c0_0] : memref<256x36xbf16, #tpu.memory_space<vmem>>, vector<256x36xbf16>
    %c0_1 = arith.constant 0 : index
    %c0_2 = arith.constant 0 : index
    %1 = vector.load %arg2[%c0_1, %c0_2] : memref<36x32xbf16, #tpu.memory_space<vmem>>, vector<36x32xbf16>
    %cst = arith.constant dense<0.000000e+00> : vector<256x32xf32>
    %2 = tpu.matmul %0, %1, %cst {dimension_numbers = #tpu.dot_dimension_numbers<[1], [0], [0], [1], [0, 0, 1, 1], [], []>} : vector<256x36xbf16>, vector<36x32xbf16>, vector<256x32xf32> -> vector<256x32xf32>
    %c0_3 = arith.constant 0 : index
    %c0_4 = arith.constant 0 : index
    %3 = vector.load %arg3[%c0_3, %c0_4] : memref<1x32xf32, #tpu.memory_space<vmem>>, vector<1x32xf32>
    %4 = vector.broadcast %3 : vector<1x32xf32> to vector<256x32xf32>
    %5 = arith.addf %2, %4 : vector<256x32xf32>
    %cst_5 = arith.constant 0.000000e+00 : f32
    %6 = vector.broadcast %cst_5 : f32 to vector<256x32xf32>
    %7 = arith.maximumf %5, %6 : vector<256x32xf32>
    %8 = arith.truncf %7 : vector<256x32xf32> to vector<256x32xbf16>
    %c0_6 = arith.constant 0 : index
    %c0_7 = arith.constant 0 : index
    %9 = vector.load %arg4[%c0_6, %c0_7] : memref<32x128xbf16, #tpu.memory_space<vmem>>, vector<32x128xbf16>
    %cst_8 = arith.constant dense<0.000000e+00> : vector<256x128xf32>
    %10 = tpu.matmul %8, %9, %cst_8 {dimension_numbers = #tpu.dot_dimension_numbers<[1], [0], [0], [1], [0, 0, 1, 1], [], []>} : vector<256x32xbf16>, vector<32x128xbf16>, vector<256x128xf32> -> vector<256x128xf32>
    %c0_9 = arith.constant 0 : index
    %c0_10 = arith.constant 0 : index
    %11 = vector.load %arg5[%c0_9, %c0_10] : memref<1x128xf32, #tpu.memory_space<vmem>>, vector<1x128xf32>
    %12 = vector.broadcast %11 : vector<1x128xf32> to vector<256x128xf32>
    %13 = arith.addf %10, %12 : vector<256x128xf32>
    %c0_11 = arith.constant 0 : index
    %c0_12 = arith.constant 0 : index
    %14 = vector.load %arg6[%c0_11, %c0_12] : memref<256x128xf32, #tpu.memory_space<vmem>>, vector<256x128xf32>
    tpu.vector_store %arg6[%c0_11, %c0_12], %13 {strides = array<i32>} : memref<256x128xf32, #tpu.memory_space<vmem>>, vector<256x128xf32>,
    return
  }
  func.func @transform_0(%arg0: i32) -> (i32, i32) {
    %c0_i32 = arith.constant 0 : i32
    %c0_i32_0 = arith.constant 0 : i32
    return %arg0, %c0_i32 : i32, i32
  }
  func.func @transform_1(%arg0: i32) -> (i32, i32) {
    %c0_i32 = arith.constant 0 : i32
    %c0_i32_0 = arith.constant 0 : i32
    %c0_i32_1 = arith.constant 0 : i32
    return %c0_i32, %c0_i32_0 : i32, i32
  }
  func.func @transform_2(%arg0: i32) -> (i32, i32) {
    %c0_i32 = arith.constant 0 : i32
    %c0_i32_0 = arith.constant 0 : i32
    %c0_i32_1 = arith.constant 0 : i32
    return %c0_i32, %c0_i32_0 : i32, i32
  }
  func.func @transform_3(%arg0: i32) -> (i32, i32) {
    %c0_i32 = arith.constant 0 : i32
    %c0_i32_0 = arith.constant 0 : i32
    %c0_i32_1 = arith.constant 0 : i32
    return %c0_i32, %c0_i32_0 : i32, i32
  }
  func.func @transform_4(%arg0: i32) -> (i32, i32) {
    %c0_i32 = arith.constant 0 : i32
    %c0_i32_0 = arith.constant 0 : i32
    %c0_i32_1 = arith.constant 0 : i32
    return %c0_i32, %c0_i32_0 : i32, i32
  }
  func.func @transform_5(%arg0: i32) -> (i32, i32) {
    %c0_i32 = arith.constant 0 : i32
    %c0_i32_0 = arith.constant 0 : i32
    return %arg0, %c0_i32 : i32, i32
  }
}

</mosaic_0001>

<bundles_post_ra>
// kernel: tpu_custom_call.1
= control target key start
LH: loop header
LB: loop body
LE: loop exit
PB: predicated region body
PF: predicated region fallthrough
CT: control target
= control target key end

     0   :  { %10 = vsyncpa [#allocation3], 0  ;;  %s1588_s0 = inlined_call_operand.vmem [shape: bf16[512,36], index: 0, kind: input, shape index: {}]   ;;  %s1589_s1 = inlined_call_operand.vmem [shape: bf16[36,32], index: 1, kind: input, shape index: {}]   ;;  %s1590_s2 = inlined_call_operand.vmem [shape: f32[1,32], index: 2, kind: input, shape index: {}]   ;;  %s1591_s3 = inlined_call_operand.vmem [shape: bf16[32,128], index: 3, kind: input, shape index: {}]   ;;  %s1592_s4 = inlined_call_operand.vmem [shape: f32[1,128], index: 4, kind: input, shape index: {}]   ;;  %s1593_s5 = inlined_call_operand.hbm [shape: f32[512,128], index: 5, kind: output, shape index: {}]  }
   0x1   :  { %12 = vsyncpa [#allocation3 + $0x1], 0  ;;  %s1308_s18 = smov 0   ;;  %s1310_s19 = smov 0  }
   0x2   :  { %s1312_s20 = smov 0   ;;  %s1314_s21 = smov 0  }
   0x3 LB: > { %s1329_s22 = sadd.s32 4294967295, %s1273_s21   ;;  %s969_s23 = sadd.s32 4294967294, %s1273_s21   ;;  %s1273_s21 = sphi %s1314_s21, %s1599_s21   ;;  %s1269_s20 = sphi %s1312_s20, %s1598_s20   ;;  %s1265_s19 = sphi %s1310_s19, %s1597_s19   ;;  %s1261_s18 = sphi %s1308_s18, %s1596_s18  }
   0x4   : > { %s1333_s24 = sadd.s32 1, %s1273_s21   ;;  %s135_s25 = sadd.s32 1, %s1269_s20 }
   0x5   : > { %s132_s26 = ssub.s32 %s1273_s21, %s1333_s24  ;;  %p145_p0 = scmp.ne.s32.totalorder %s1269_s20, %s1265_s19 }
   0x6   : > { %p133_p1 = scmp.eq.s32.totalorder %s132_s26, 0  ;;  %p146_p2 = scmp.eq.s32.totalorder %s1329_s22, 1 }
   0x7   : > { %p151_p3 = scmp.ne.s32.totalorder %s1265_s19, %s1261_s18  ;;  %p152_p4 = scmp.eq.s32.totalorder %s969_s23, 1 }
   0x8   : > { %s1344_s27 = scalar_select %p133_p1, %s1269_s20, %s135_s25  }
   0x9   : > { %p1346_p5 = por %p146_p2, %p145_p0  ;;  %p1350_p6 = por %p152_p4, %p151_p3 }
   0xa   : > { %p972_p7 = scmp.ge.s32.totalorder %s1273_s21, 1  ;;  %p191_p8 = scmp.lt.s32.totalorder %s1273_s21, 3 }
   0xc   : > { %p192_p9 = pnand %p972_p7, %p191_p8 }
   0xd   : > { %v1190_v0 = vld [vmem:[%s1589_s1] sm:$0xff] (!%p192_p9)   ;;  %v1191_v1 = vld [vmem:[%s1589_s1 + $0x8] sm:$0xff] (!%p192_p9)   ;;  %s974_s9 = sshll.u32 (!%p192_p9), %s1329_s22, 5  ;;  %v1192_v2 = vld [vmem:[%s1589_s1 + $0x10] ss:$0 sps:$4 sm:$0x33] (!%p192_p9)  }
   0xe   : > { %195 = sbr.rel (%p192_p9) target bundleno = 536 (0x218), region = 40  ;;  %1074 = vmatprep.subr.bf16.mxu0 (!%p192_p9), %v1190_v0  ;;  %p220_p10 = scmp.lt.s32.totalorder (!%p192_p9), %s974_s9, 63  ;;  %vm415_vm0 = vcmask (!%p192_p9), 1041408   ;;  %vm366_vm1 = vcmask (!%p192_p9), 293888   ;;  %v1209_v20 = vld [vmem:[%s1591_s3] sm:$0xff] (!%p192_p9)   ;;  %v1210_v21 = vld [vmem:[%s1591_s3 + $0x8] sm:$0xff] (!%p192_p9)  }
   0xf   : > { %1075 = vmatpush3.bf16.msra.mxu0 (!%p192_p9), %v1190_v0  ;;  %v417_v3 = vsel (!%p192_p9), %vm415_vm0, %v1192_v2, 0  ;;  %1112 = vmatprep.subr.bf16.mxu1 (!%p192_p9), %v1209_v20  ;;  %v1412_v22 = vld [vmem:[%s1590_s2] ss:$0 sm:$0xff] (!%p192_p9)  ;;  %vm651_vm2 = vcmask (!%p192_p9), 261120   ;;  %s216_s6 = sand.u32 (!%p192_p9), 1, %s1265_s19   ;;  %s1036_s11 = sshll.u32 (!%p192_p9), %s1329_s22, 12 }
  0x10   : > { %1076 = vmatprep.subr.bf16.mxu0 (!%p192_p9), %v1191_v1  ;;  %1113 = vmatpush3.bf16.msra.mxu1 (!%p192_p9), %v1209_v20  ;;  %s973_s7 = sshll.u32 (!%p192_p9), %s216_s6, 8  ;;  %s1547_s22 = scalar_lea.sflag (!%p192_p9), [#allocation3], %s216_s6 }
  0x11   : > { %1114 = vmatprep.subr.bf16.mxu1 (!%p192_p9), %v1210_v21  ;;  %s1472_s10 = scalar_lea.vmem (!%p192_p9), [#allocation2], %s973_s7  ;;  %s1275_s17 = smov (!%p192_p9), [#allocation2]  }
  0x12   : > { %s1215_s23 = sshll.u32 (!%p192_p9), %s1275_s17, 4  ;;  %s1216_s23 = int_to_ptr.vmem [resolvable:$false] %s1215_s23 }
  0x13   : > { %1077 = vmatpush3.bf16.msra.mxu0 (!%p192_p9), %v1191_v1  ;;  %s1217_s25 = scalar_lea.vmem (!%p192_p9), %s1216_s23, 8192 }
  0x14   : > { %1148 = vmatprep.subr.msk.bf16.mxu0 (!%p192_p9), %vm415_vm0, %v1192_v2  ;;  %1115 = vmatpush3.bf16.msra.mxu1 (!%p192_p9), %v1210_v21 }
  0x15   : > { %s1601_s9 = smov (!%p220_p10, %s974_s9), 63 }
  0x16   : > { %s975_s12 = sshll.u32 %s1601_s9, 2 }
  0x17   : > { %s1369_s15 = scalar_lea.vmem %s1588_s0, %s975_s12  ;;  %1079 = vmatpush3.bf16.msra.mxu0 %v417_v3  ;;  %s907_s12 = sshll.u32 %s1472_s10, 4  ;;  %s1539_s12 = int_to_ptr.vmem [resolvable:$true] %s907_s12 }
  0x18   : > { %v1193_v4 = vld [vmem:[%s1369_s15] sm:$0xff]   ;;  %v1194_v5 = vld [vmem:[%s1369_s15 + $0x8] sm:$0xff]   ;;  %v1195_v6 = vld [vmem:[%s1369_s15 + $0x10] sm:$0xff]   ;;  %s1211_s16 = scalar_lea.vmem %s1539_s12, 4096  ;;  %p1218_p0 = scmp.lt.s32.totalorder %s1539_s12, %s1216_s23 }
  0x19   : > { %1080 = vmatprep.mubr.msk.bf16.mxu0 %vm366_vm1, %v1193_v4  ;;  %v1196_v7 = vld [vmem:[%s1369_s15 + $0x18] sm:$0xff]   ;;  %v1197_v8 = vld [vmem:[%s1369_s15 + $0x20] sm:$0xff]   ;;  %v1198_v9 = vld [vmem:[%s1369_s15 + $0x28] sm:$0xff]   ;;  %p1212_p11 = scmp.ne.s32.totalorder %s1539_s12, %s1211_s16  ;;  %p1219_p1 = scmp.lt.s32.totalorder %s1217_s25, %s1211_s16 }
  0x1a   : > { %1081 = vmatmul.mubr.msk.bf16.vlgmr.msra.gmra.mrb[0].mxu0 %vm366_vm1, %v1194_v5  ;;  %v1199_v10 = vld [vmem:[%s1369_s15 + $0x30] sm:$0xff]   ;;  %v1200_v11 = vld [vmem:[%s1369_s15 + $0x38] sm:$0xff]   ;;  %v1201_v12 = vld [vmem:[%s1369_s15 + $0x40] sm:$0xff]  }
  0x1b   : > { %1084 = vmatprep.mubr.msk.bf16.mxu0 %vm366_vm1, %v1195_v6  ;;  %v1202_v13 = vld [vmem:[%s1369_s15 + $0x48] sm:$0xff]   ;;  %v1203_v14 = vld [vmem:[%s1369_s15 + $0x50] sm:$0xff]   ;;  %v1204_v15 = vld [vmem:[%s1369_s15 + $0x58] sm:$0xff]   ;;  %p1213_p12 = pnand %p1212_p11, %p1346_p5  ;;  %p1220_p2 = por %p1219_p1, %p1218_p0 }
  0x1c   : > { %v1205_v16 = vld [vmem:[%s1369_s15 + $0x60] sm:$0xff]   ;;  %v1206_v17 = vld [vmem:[%s1369_s15 + $0x68] sm:$0xff]   ;;  %v1207_v18 = vld [vmem:[%s1369_s15 + $0x70] sm:$0xff]  }
  0x1d   : > { %v1208_v19 = vld [vmem:[%s1369_s15 + $0x78] sm:$0xff]   ;;  %s1537_s15 = scalar_lea.hbm %s1593_s5, %s1036_s11  ;;  %p1214_p13 = pneg %p1213_p12 }
  0x1f   : > { %p1221_p3 = pnand %p1220_p2, %p1214_p13 }
  0x22   : > { %1085 = vmatmul.mubr.msk.bf16.gmra.mrb[4].mxu0 %vm366_vm1, %v1196_v7 }
  0x23   : > { %1088 = vmatprep.mubr.msk.bf16.mxu0 %vm366_vm1, %v1197_v8 }
  0x2a   : > { %1089 = vmatmul.mubr.msk.bf16.gmra.mrb[8].mxu0 %vm366_vm1, %v1198_v9 }
  0x2b   : > { %1092 = vmatprep.mubr.msk.bf16.mxu0 %vm366_vm1, %v1199_v10 }
  0x32   : > { %1093 = vmatmul.mubr.msk.bf16.gmra.mrb[12].mxu0 %vm366_vm1, %v1200_v11 }
  0x33   : > { %1096 = vmatprep.mubr.msk.bf16.mxu0 %vm366_vm1, %v1201_v12 }
  0x3a   : > { %1097 = vmatmul.mubr.msk.bf16.gmra.mrb[16].mxu0 %vm366_vm1, %v1202_v13 }
  0x3b   : > { %1100 = vmatprep.mubr.msk.bf16.mxu0 %vm366_vm1, %v1203_v14 }
  0x42   : > { %1101 = vmatmul.mubr.msk.bf16.gmra.mrb[20].mxu0 %vm366_vm1, %v1204_v15 }
  0x43   : > { %1104 = vmatprep.mubr.msk.bf16.mxu0 %vm366_vm1, %v1205_v16 }
  0x4a   : > { %1105 = vmatmul.mubr.msk.bf16.gmra.mrb[24].mxu0 %vm366_vm1, %v1206_v17 }
  0x4b   : > { %1108 = vmatprep.mubr.msk.bf16.mxu0 %vm366_vm1, %v1207_v18 }
  0x52   : > { %1109 = vmatmul.mubr.msk.bf16.gmra.mrb[28].mxu0 %vm366_vm1, %v1208_v19 }
  0xed   : > { %v1082_v23 = vpop.f32.mrb[0].mxu0 }
  0xee   : > { %v462_v24 = vadd.f32 %v1082_v23, %v1412_v22  ;;  %v453_v25 = vpop.f32.mrb[1].mxu0 }
  0xef   : > { %v454_v26 = vadd.f32 %v1412_v22, %v453_v25  ;;  %v1083_v27 = vpop.f32.mrb[2].mxu0 }
  0xf0   : > { %v465_v28 = vadd.f32 %v1083_v27, %v1412_v22  ;;  %v456_v29 = vpop.f32.mrb[3].mxu0  ;;  %v582_v31 = vmax.f32 %v462_v24, 0.0 }
  0xf1   : > { %v457_v30 = vadd.f32 %v1412_v22, %v456_v29  ;;  %v580_v33 = vmax.f32 %v454_v26, 0.0 }
  0xf2   : > { %v583_v32 = vmax.f32 %v465_v28, 0.0 }
  0xf3   : > { %v581_v34 = vmax.f32 %v457_v30, 0.0 }
  0xf4   : > { %v613_v35 = vpack.c.bf16 %v583_v32, %v582_v31 }
  0xf5   : > { %v1086_v36 = vpop.f32.mrb[4].mxu0  ;;  %v612_v37 = vpack.c.bf16 %v581_v34, %v580_v33 }
  0xf6   : > { %v478_v38 = vadd.f32 %v1086_v36, %v1412_v22  ;;  %v469_v39 = vpop.f32.mrb[5].mxu0 }
  0xf7   : > { %v470_v40 = vadd.f32 %v1412_v22, %v469_v39  ;;  %v1087_v41 = vpop.f32.mrb[6].mxu0  ;;  %1116 = vmatprep.mubr.msk.bf16.mxu1 %vm651_vm2, %v612_v37 }
  0xf8   : > { %v481_v42 = vadd.f32 %v1087_v41, %v1412_v22  ;;  %v472_v43 = vpop.f32.mrb[7].mxu0  ;;  %1117 = vmatmul.mubr.msk.bf16.vlgmr.msra.gmra.mrb[0].mxu1 %vm651_vm2, %v613_v35  ;;  %v586_v45 = vmax.f32 %v478_v38, 0.0 }
  0xf9   : > { %v473_v44 = vadd.f32 %v1412_v22, %v472_v43  ;;  %v584_v47 = vmax.f32 %v470_v40, 0.0 }
  0xfa   : > { %v587_v46 = vmax.f32 %v481_v42, 0.0 }
  0xfb   : > { %v585_v48 = vmax.f32 %v473_v44, 0.0 }
  0xfc   : > { %v615_v49 = vpack.c.bf16 %v587_v46, %v586_v45 }
  0xfd   : > { %v614_v50 = vpack.c.bf16 %v585_v48, %v584_v47  ;;  %v1090_v51 = vpop.f32.mrb[8].mxu0 }
  0xfe   : > { %v494_v52 = vadd.f32 %v1090_v51, %v1412_v22  ;;  %v485_v53 = vpop.f32.mrb[9].mxu0 }
  0xff   : > { %v486_v54 = vadd.f32 %v1412_v22, %v485_v53  ;;  %v1091_v55 = vpop.f32.mrb[10].mxu0  ;;  %1120 = vmatprep.mubr.msk.bf16.mxu1 %vm651_vm2, %v614_v50 }
 0x100   : > { %v497_v56 = vadd.f32 %v1091_v55, %v1412_v22  ;;  %v488_v57 = vpop.f32.mrb[11].mxu0  ;;  %1121 = vmatmul.mubr.msk.bf16.gmra.mrb[4].mxu1 %vm651_vm2, %v615_v49  ;;  %v590_v59 = vmax.f32 %v494_v52, 0.0 }
 0x101   : > { %v489_v58 = vadd.f32 %v1412_v22, %v488_v57  ;;  %v588_v61 = vmax.f32 %v486_v54, 0.0 }
 0x102   : > { %v591_v60 = vmax.f32 %v497_v56, 0.0 }
 0x103   : > { %v589_v62 = vmax.f32 %v489_v58, 0.0 }
 0x104   : > { %v617_v63 = vpack.c.bf16 %v591_v60, %v590_v59 }
 0x105   : > { %v616_v0 = vpack.c.bf16 %v589_v62, %v588_v61  ;;  %v1094_v1 = vpop.f32.mrb[12].mxu0 }
 0x106   : > { %v510_v2 = vadd.f32 %v1094_v1, %v1412_v22  ;;  %v501_v3 = vpop.f32.mrb[13].mxu0 }
 0x107   : > { %v502_v4 = vadd.f32 %v1412_v22, %v501_v3  ;;  %v1095_v5 = vpop.f32.mrb[14].mxu0  ;;  %1124 = vmatprep.mubr.msk.bf16.mxu1 %vm651_vm2, %v616_v0 }
 0x108   : > { %v513_v6 = vadd.f32 %v1095_v5, %v1412_v22  ;;  %v504_v7 = vpop.f32.mrb[15].mxu0  ;;  %1125 = vmatmul.mubr.msk.bf16.gmra.mrb[8].mxu1 %vm651_vm2, %v617_v63  ;;  %v594_v9 = vmax.f32 %v510_v2, 0.0 }
 0x109   : > { %v505_v8 = vadd.f32 %v1412_v22, %v504_v7  ;;  %v592_v11 = vmax.f32 %v502_v4, 0.0 }
 0x10a   : > { %v595_v10 = vmax.f32 %v513_v6, 0.0 }
 0x10b   : > { %v593_v12 = vmax.f32 %v505_v8, 0.0  ;;  %v1468_v8 = vld [vmem:[%s1592_s4] ss:$0 sm:$0xff] }
 0x10c   : > { %v619_v13 = vpack.c.bf16 %v595_v10, %v594_v9 }
 0x10d   : > { %v618_v14 = vpack.c.bf16 %v593_v12, %v592_v11  ;;  %v1098_v15 = vpop.f32.mrb[16].mxu0 }
 0x10e   : > { %v526_v16 = vadd.f32 %v1098_v15, %v1412_v22  ;;  %v517_v17 = vpop.f32.mrb[17].mxu0 }
 0x10f   : > { %v518_v18 = vadd.f32 %v1412_v22, %v517_v17  ;;  %v1099_v19 = vpop.f32.mrb[18].mxu0  ;;  %1128 = vmatprep.mubr.msk.bf16.mxu1 %vm651_vm2, %v618_v14 }
 0x110   : > { %v529_v20 = vadd.f32 %v1099_v19, %v1412_v22  ;;  %v520_v21 = vpop.f32.mrb[19].mxu0  ;;  %1129 = vmatmul.mubr.msk.bf16.gmra.mrb[12].mxu1 %vm651_vm2, %v619_v13  ;;  %v598_v24 = vmax.f32 %v526_v16, 0.0 }
 0x111   : > { %v521_v23 = vadd.f32 %v1412_v22, %v520_v21  ;;  %v596_v26 = vmax.f32 %v518_v18, 0.0 }
 0x112   : > { %v599_v25 = vmax.f32 %v529_v20, 0.0 }
 0x113   : > { %v597_v27 = vmax.f32 %v521_v23, 0.0 }
 0x114   : > { %v621_v28 = vpack.c.bf16 %v599_v25, %v598_v24 }
 0x115   : > { %v620_v29 = vpack.c.bf16 %v597_v27, %v596_v26  ;;  %v1102_v30 = vpop.f32.mrb[20].mxu0 }
 0x116   : > { %v542_v31 = vadd.f32 %v1102_v30, %v1412_v22  ;;  %v533_v32 = vpop.f32.mrb[21].mxu0 }
 0x117   : > { %v534_v33 = vadd.f32 %v1412_v22, %v533_v32  ;;  %v1103_v34 = vpop.f32.mrb[22].mxu0  ;;  %1132 = vmatprep.mubr.msk.bf16.mxu1 %vm651_vm2, %v620_v29 }
 0x118   : > { %v545_v35 = vadd.f32 %v1103_v34, %v1412_v22  ;;  %v536_v36 = vpop.f32.mrb[23].mxu0  ;;  %1133 = vmatmul.mubr.msk.bf16.gmra.mrb[16].mxu1 %vm651_vm2, %v621_v28  ;;  %v602_v38 = vmax.f32 %v542_v31, 0.0 }
 0x119   : > { %v537_v37 = vadd.f32 %v1412_v22, %v536_v36  ;;  %v600_v40 = vmax.f32 %v534_v33, 0.0 }
 0x11a   : > { %v603_v39 = vmax.f32 %v545_v35, 0.0 }
 0x11b   : > { %v601_v41 = vmax.f32 %v537_v37, 0.0 }
 0x11c   : > { %v623_v42 = vpack.c.bf16 %v603_v39, %v602_v38 }
 0x11d   : > { %v622_v43 = vpack.c.bf16 %v601_v41, %v600_v40  ;;  %v1106_v44 = vpop.f32.mrb[24].mxu0 }
 0x11e   : > { %v558_v45 = vadd.f32 %v1106_v44, %v1412_v22  ;;  %v549_v46 = vpop.f32.mrb[25].mxu0 }
 0x11f   : > { %v550_v47 = vadd.f32 %v1412_v22, %v549_v46  ;;  %v1107_v48 = vpop.f32.mrb[26].mxu0  ;;  %1136 = vmatprep.mubr.msk.bf16.mxu1 %vm651_vm2, %v622_v43 }
 0x120   : > { %v561_v49 = vadd.f32 %v1107_v48, %v1412_v22  ;;  %v552_v50 = vpop.f32.mrb[27].mxu0  ;;  %1137 = vmatmul.mubr.msk.bf16.gmra.mrb[20].mxu1 %vm651_vm2, %v623_v42  ;;  %v606_v52 = vmax.f32 %v558_v45, 0.0 }
 0x121   : > { %v553_v51 = vadd.f32 %v1412_v22, %v552_v50  ;;  %v604_v54 = vmax.f32 %v550_v47, 0.0 }
 0x122   : > { %v607_v53 = vmax.f32 %v561_v49, 0.0 }
 0x123   : > { %v605_v55 = vmax.f32 %v553_v51, 0.0 }
 0x124   : > { %v625_v56 = vpack.c.bf16 %v607_v53, %v606_v52 }
 0x125   : > { %v624_v57 = vpack.c.bf16 %v605_v55, %v604_v54  ;;  %v1110_v58 = vpop.f32.mrb[28].mxu0 }
 0x126   : > { %v574_v59 = vadd.f32 %v1110_v58, %v1412_v22  ;;  %v565_v60 = vpop.f32.mrb[29].mxu0 }
 0x127   : > { %v566_v61 = vadd.f32 %v1412_v22, %v565_v60  ;;  %v1111_v62 = vpop.f32.mrb[30].mxu0  ;;  %1140 = vmatprep.mubr.msk.bf16.mxu1 %vm651_vm2, %v624_v57 }
 0x128   : > { %v577_v63 = vadd.f32 %v1111_v62, %v1412_v22  ;;  %v568_v0 = vpop.f32.mrb[31].mxu0  ;;  %1141 = vmatmul.mubr.msk.bf16.gmra.mrb[24].mxu1 %vm651_vm2, %v625_v56  ;;  %v610_v2 = vmax.f32 %v574_v59, 0.0 }
 0x129   : > { %v569_v1 = vadd.f32 %v1412_v22, %v568_v0  ;;  %v608_v4 = vmax.f32 %v566_v61, 0.0 }
 0x12a   : > { %v611_v3 = vmax.f32 %v577_v63, 0.0 }
 0x12b   : > { %v609_v5 = vmax.f32 %v569_v1, 0.0 }
 0x12c   : > { %v627_v6 = vpack.c.bf16 %v611_v3, %v610_v2 }
 0x12d   : > { %v626_v7 = vpack.c.bf16 %v609_v5, %v608_v4 }
 0x12f   : > { %1144 = vmatprep.mubr.msk.bf16.mxu1 %vm651_vm2, %v626_v7 }
 0x130   : > { %1145 = vmatmul.mubr.msk.bf16.gmra.mrb[28].mxu1 %vm651_vm2, %v627_v6 }
 0x1cb   : > { %v1118_v9 = vpop.f32.mrb[0].mxu1 }
 0x1cc   : > { %v743_v22 = vadd.f32 %v1118_v9, %v1468_v8  ;;  %v734_v10 = vpop.f32.mrb[1].mxu1 }
 0x1cd   : > { %v735_v11 = vadd.f32 %v1468_v8, %v734_v10  ;;  %v1119_v12 = vpop.f32.mrb[2].mxu1 }
 0x1ce   : > { %863 = vst [vmem:[%s1472_s10 + $0x10] sm:$0xff] %v743_v22  ;;  %v746_v13 = vadd.f32 %v1119_v12, %v1468_v8  ;;  %v737_v14 = vpop.f32.mrb[3].mxu1 }
 0x1cf   : > { %861 = vst [vmem:[%s1472_s10] sm:$0xff] %v735_v11  ;;  %v738_v15 = vadd.f32 %v1468_v8, %v737_v14 }
 0x1d0   : > { %864 = vst [vmem:[%s1472_s10 + $0x18] sm:$0xff] %v746_v13 }
 0x1d1   : > { %862 = vst [vmem:[%s1472_s10 + $0x8] sm:$0xff] %v738_v15 }
 0x1d3   : > { %v1122_v16 = vpop.f32.mrb[4].mxu1 }
 0x1d4   : > { %v759_v17 = vadd.f32 %v1122_v16, %v1468_v8  ;;  %v750_v18 = vpop.f32.mrb[5].mxu1 }
 0x1d5   : > { %v751_v19 = vadd.f32 %v1468_v8, %v750_v18  ;;  %v1123_v20 = vpop.f32.mrb[6].mxu1 }
 0x1d6   : > { %867 = vst [vmem:[%s1472_s10 + $0x30] sm:$0xff] %v759_v17  ;;  %v762_v21 = vadd.f32 %v1123_v20, %v1468_v8  ;;  %v753_v23 = vpop.f32.mrb[7].mxu1 }
 0x1d7   : > { %865 = vst [vmem:[%s1472_s10 + $0x20] sm:$0xff] %v751_v19  ;;  %v754_v24 = vadd.f32 %v1468_v8, %v753_v23 }
 0x1d8   : > { %868 = vst [vmem:[%s1472_s10 + $0x38] sm:$0xff] %v762_v21 }
 0x1d9   : > { %866 = vst [vmem:[%s1472_s10 + $0x28] sm:$0xff] %v754_v24 }
 0x1db   : > { %v1126_v25 = vpop.f32.mrb[8].mxu1 }
 0x1dc   : > { %v775_v26 = vadd.f32 %v1126_v25, %v1468_v8  ;;  %v766_v27 = vpop.f32.mrb[9].mxu1 }
 0x1dd   : > { %v767_v28 = vadd.f32 %v1468_v8, %v766_v27  ;;  %v1127_v29 = vpop.f32.mrb[10].mxu1 }
 0x1de   : > { %871 = vst [vmem:[%s1472_s10 + $0x50] sm:$0xff] %v775_v26  ;;  %v778_v30 = vadd.f32 %v1127_v29, %v1468_v8  ;;  %v769_v31 = vpop.f32.mrb[11].mxu1 }
 0x1df   : > { %869 = vst [vmem:[%s1472_s10 + $0x40] sm:$0xff] %v767_v28  ;;  %v770_v32 = vadd.f32 %v1468_v8, %v769_v31 }
 0x1e0   : > { %872 = vst [vmem:[%s1472_s10 + $0x58] sm:$0xff] %v778_v30 }
 0x1e1   : > { %870 = vst [vmem:[%s1472_s10 + $0x48] sm:$0xff] %v770_v32 }
 0x1e3   : > { %v1130_v33 = vpop.f32.mrb[12].mxu1 }
 0x1e4   : > { %v791_v34 = vadd.f32 %v1130_v33, %v1468_v8  ;;  %v782_v35 = vpop.f32.mrb[13].mxu1 }
 0x1e5   : > { %v783_v36 = vadd.f32 %v1468_v8, %v782_v35  ;;  %v1131_v37 = vpop.f32.mrb[14].mxu1 }
 0x1e6   : > { %875 = vst [vmem:[%s1472_s10 + $0x70] sm:$0xff] %v791_v34  ;;  %v794_v38 = vadd.f32 %v1131_v37, %v1468_v8  ;;  %v785_v39 = vpop.f32.mrb[15].mxu1 }
 0x1e7   : > { %873 = vst [vmem:[%s1472_s10 + $0x60] sm:$0xff] %v783_v36  ;;  %v786_v40 = vadd.f32 %v1468_v8, %v785_v39 }
 0x1e8   : > { %876 = vst [vmem:[%s1472_s10 + $0x78] sm:$0xff] %v794_v38 }
 0x1e9   : > { %874 = vst [vmem:[%s1472_s10 + $0x68] sm:$0xff] %v786_v40 }
 0x1eb   : > { %v1134_v41 = vpop.f32.mrb[16].mxu1 }
 0x1ec   : > { %v807_v42 = vadd.f32 %v1134_v41, %v1468_v8  ;;  %v798_v43 = vpop.f32.mrb[17].mxu1 }
 0x1ed   : > { %v799_v44 = vadd.f32 %v1468_v8, %v798_v43  ;;  %v1135_v45 = vpop.f32.mrb[18].mxu1 }
 0x1ee   : > { %879 = vst [vmem:[%s1472_s10 + $0x90] sm:$0xff] %v807_v42  ;;  %v810_v46 = vadd.f32 %v1135_v45, %v1468_v8  ;;  %v801_v47 = vpop.f32.mrb[19].mxu1 }
 0x1ef   : > { %877 = vst [vmem:[%s1472_s10 + $0x80] sm:$0xff] %v799_v44  ;;  %v802_v48 = vadd.f32 %v1468_v8, %v801_v47 }
 0x1f0   : > { %880 = vst [vmem:[%s1472_s10 + $0x98] sm:$0xff] %v810_v46 }
 0x1f1   : > { %878 = vst [vmem:[%s1472_s10 + $0x88] sm:$0xff] %v802_v48 }
 0x1f3   : > { %v1138_v49 = vpop.f32.mrb[20].mxu1 }
 0x1f4   : > { %v823_v50 = vadd.f32 %v1138_v49, %v1468_v8  ;;  %v814_v51 = vpop.f32.mrb[21].mxu1 }
 0x1f5   : > { %v815_v52 = vadd.f32 %v1468_v8, %v814_v51  ;;  %v1139_v53 = vpop.f32.mrb[22].mxu1 }
 0x1f6   : > { %883 = vst [vmem:[%s1472_s10 + $0xb0] sm:$0xff] %v823_v50  ;;  %v826_v54 = vadd.f32 %v1139_v53, %v1468_v8  ;;  %v817_v55 = vpop.f32.mrb[23].mxu1 }
 0x1f7   : > { %881 = vst [vmem:[%s1472_s10 + $0xa0] sm:$0xff] %v815_v52  ;;  %v818_v56 = vadd.f32 %v1468_v8, %v817_v55 }
 0x1f8   : > { %884 = vst [vmem:[%s1472_s10 + $0xb8] sm:$0xff] %v826_v54 }
 0x1f9   : > { %882 = vst [vmem:[%s1472_s10 + $0xa8] sm:$0xff] %v818_v56 }
 0x1fb   : > { %v1142_v57 = vpop.f32.mrb[24].mxu1 }
 0x1fc   : > { %v839_v58 = vadd.f32 %v1142_v57, %v1468_v8  ;;  %v830_v59 = vpop.f32.mrb[25].mxu1 }
 0x1fd   : > { %v831_v60 = vadd.f32 %v1468_v8, %v830_v59  ;;  %v1143_v61 = vpop.f32.mrb[26].mxu1 }
 0x1fe   : > { %887 = vst [vmem:[%s1472_s10 + $0xd0] sm:$0xff] %v839_v58  ;;  %v842_v62 = vadd.f32 %v1143_v61, %v1468_v8  ;;  %v833_v63 = vpop.f32.mrb[27].mxu1 }
 0x1ff   : > { %885 = vst [vmem:[%s1472_s10 + $0xc0] sm:$0xff] %v831_v60  ;;  %v834_v0 = vadd.f32 %v1468_v8, %v833_v63 }
 0x200   : > { %888 = vst [vmem:[%s1472_s10 + $0xd8] sm:$0xff] %v842_v62 }
 0x201   : > { %886 = vst [vmem:[%s1472_s10 + $0xc8] sm:$0xff] %v834_v0 }
 0x203   : > { %v1146_v1 = vpop.f32.mrb[28].mxu1 }
 0x204   : > { %v855_v2 = vadd.f32 %v1146_v1, %v1468_v8  ;;  %v846_v3 = vpop.f32.mrb[29].mxu1 }
 0x205   : > { %v847_v4 = vadd.f32 %v1468_v8, %v846_v3  ;;  %v1147_v5 = vpop.f32.mrb[30].mxu1 }
 0x206   : > { %891 = vst [vmem:[%s1472_s10 + $0xf0] sm:$0xff] %v855_v2  ;;  %v858_v6 = vadd.f32 %v1147_v5, %v1468_v8  ;;  %v849_v7 = vpop.f32.mrb[31].mxu1 }
 0x207   : > { %889 = vst [vmem:[%s1472_s10 + $0xe0] sm:$0xff] %v847_v4  ;;  %v850_v9 = vadd.f32 %v1468_v8, %v849_v7 }
 0x208   : > { %892 = vst [vmem:[%s1472_s10 + $0xf8] sm:$0xff] %v858_v6 }
 0x209   : > { %890 = vst [vmem:[%s1472_s10 + $0xe8] sm:$0xff] %v850_v9 }
 0x20a   : > { %1224 = shalt.err (!%p1221_p3)
}
 0x20b   : > { %s1225_s26 = scalar_lea.hbm %s1537_s15, 4096  ;;  %s1229_s7 = scalar_lea.hbm %s1593_s5, 8192 }
 0x20c   : > { %p1226_p4 = scmp.ne.s32.totalorder %s1537_s15, %s1225_s26  ;;  %p1230_p9 = scmp.lt.u32.totalorder %s1537_s15, %s1593_s5 }
 0x20d   : > { %p1231_p10 = scmp.lt.u32.totalorder %s1229_s7, %s1225_s26  ;;  %p1233_p12 = scmp.lt.u32.totalorder %s1225_s26, %s1537_s15 }
 0x20e   : > { %p1227_p7 = pnand %p1226_p4, %p1346_p5 }
 0x20f   : > { %p1232_p11 = por %p1231_p10, %p1230_p9 }
 0x210   : > { %p1228_p8 = pneg %p1227_p7 }
 0x211   : > { %p1234_p13 = por %p1233_p12, %p1232_p11 }
 0x213   : > { %p1235_p0 = pnand %p1234_p13, %p1228_p8 }
 0x215   : > { %1238 = shalt.err (!%p1235_p0)
}
 0x216   : > { %s1276_s10 = smov 128   ;;  %s1277_s11 = smov 8  }
 0x217   : > { %1149 = dma.vmem_to_hbm [thread:$0]  (%p1346_p5), %s1539_s12, 4096, %s1537_s15, %s1547_s22, %s1276_s10, %s1276_s10, %s1277_s11  }
 0x218 PF: > { %p1155_p1 = scmp.ge.s32.totalorder %s1273_s21, 2  ;;  %s922_s13 = sand.u32 1, %s1261_s18  }
 0x219   : > { %s923_s14 = scalar_lea.sflag [#allocation3], %s922_s13 }
 0x21a   : > { %p1152_p2 = pnand %p1155_p1, %p1350_p6 }
 0x21c   : > { %1256 = dma.done.wait (!%p1152_p2), %s923_s14, 4096  }
 0x21d   : > { %1258 = vsyncadd (!%p1152_p2), %s923_s14, 4294963200  ;;  %p15_p3 = scmp.ge.s32.totalorder %s1333_s24, 4   ;;  %s1596_s18 = smov %s1265_s19 }
 0x21e   : > { %s1597_s19 = smov %s1269_s20  ;;  %s1598_s20 = smov %s1344_s27 }
 0x21f   : > { %s1599_s21 = smov %s1333_s24  ;;  %17 = sbr.rel (!%p15_p3) target bundleno = 3 (0x3), region = 75 }
 0x226   :  { %928 = vsyncpa [#allocation3], 1 }
 0x227   :  { %930 = vsyncpa [#allocation3 + $0x1], 1 }

</bundles_post_ra>
